<compile_context>
chip_gen: v7x
topology: tpu7x:2x2x1
jax: 0.10.0
libtpu: 0.0.40
codegen_flags: <defaults>
</compile_context>

<pallas_src>
import functools

import jax
import jax.numpy as jnp
from jax.experimental import pallas as pl
from jax.experimental.pallas import tpu as pltpu

_NEG_CLAMP = -100.0      # PyTorch BCELoss clamps log() at -100.
_NUM_CORE_SPLIT = 2      # leading "parallel" grid axis (v7x has 2 TCs/chip)


def _round_up(x, m):
    return ((x + m - 1) // m) * m


def _cdiv(a, b):
    return -(-a // b)


def _cls_loss_sum_kernel(*refs, tb, b_real, tiles_per_core, has_valid):
    if has_valid:
        pred_ref, gt_ref, valid_ref, out_ref, acc_ref = refs
    else:
        pred_ref, gt_ref, out_ref, acc_ref = refs

    c = pl.program_id(0)   # core-split axis ("parallel")
    t = pl.program_id(1)   # row-tile axis ("arbitrary" reduction)

    @pl.when(t == 0)
    def _():
        acc_ref[...] = jnp.zeros_like(acc_ref)

    p = pred_ref[...].astype(jnp.float32)
    g = gt_ref[...].astype(jnp.float32)
    # Per-element BCE with PyTorch's log clamp at -100 (supports soft labels,
    # so the two-log form is kept to preserve semantics exactly).
    log_p = jnp.maximum(jnp.log(p), _NEG_CLAMP)
    log_q = jnp.maximum(jnp.log(1.0 - p), _NEG_CLAMP)
    bce = -(g * log_p + (1.0 - g) * log_q)                      # (tb, D) f32

    if has_valid:
        bce = bce * valid_ref[...].astype(jnp.float32)          # per-row weight

    # Mask rows past the real batch (partial last tile / clamped overflow
    # tiles).  jnp.where is a select, so NaN/Inf produced from garbage rows
    # never reach the accumulator.
    tile = c * tiles_per_core + t
    row = tile * tb + jax.lax.broadcasted_iota(jnp.int32, (tb, 1), 0)
    acc_ref[...] += jnp.where(row < b_real, bce, 0.0)           # VPU adds only

    @pl.when(t == pl.num_programs(1) - 1)
    def _():
        out_ref[0, 0] = jnp.sum(acc_ref[...])                   # single final reduce


def cls_loss(pred, gt, valid=None, *, max_tile_rows=None):
    """Matches ClsLoss.forward: BCELoss(mean) over pred[valid], gt[valid]."""
    B = pred.shape[0]
    pred2 = pred.reshape(B, -1)
    gt2 = gt.reshape(B, -1)
    D = pred2.shape[1]

    # ---- generation-aware VMEM budgeting --------------------------------
    try:
        vmem_cap = int(pltpu.get_tpu_info().vmem_capacity_bytes)
    except Exception:
        vmem_cap = 64 * 1024 * 1024          # conservative (v7x-sized) default
    vmem_cap = max(vmem_cap, 16 * 1024 * 1024)
    vmem_limit = min((vmem_cap * 3) // 4, 100 * 1024 * 1024)
    buf_budget = min(vmem_cap // 2, 48 * 1024 * 1024)

    # VMEM bytes per tile row: 2 inputs x 2 pipeline buffers (storage dtype)
    # + the f32 accumulator.  Lanes are padded to 128 inside VMEM.
    d_lanes = _round_up(max(D, 1), 128)
    itemsize = max(pred2.dtype.itemsize, gt2.dtype.itemsize)
    per_row = d_lanes * (2 * 2 * itemsize + 4)
    # TODO(synk): extremely large D (>~100K) would also need lane tiling; a
    # classification head never gets close, so only rows are tiled here.

    tb_budget = max(8, buf_budget // per_row)
    if max_tile_rows is not None:
        tb_budget = min(tb_budget, max(1, int(max_tile_rows)))
    if B <= tb_budget:
        tb = B                               # single tile; block dims == array dims
    else:
        tb = max(8, (min(tb_budget, B) // 8) * 8)
    num_tiles = _cdiv(B, tb)

    # ---- grid: (core_split, row_tiles_per_core) --------------------------
    nc = _NUM_CORE_SPLIT if num_tiles >= _NUM_CORE_SPLIT else 1
    tiles_per_core = _cdiv(num_tiles, nc)
    grid = (nc, tiles_per_core)

    def tile_idx(c, t):
        # Clamp the last core's overflow tiles; their rows are masked in-kernel.
        return (jnp.minimum(c * tiles_per_core + t, num_tiles - 1), 0)

    data_spec = pl.BlockSpec((tb, D), tile_idx)
    out_spec = pl.BlockSpec((1, 1), lambda c, t: (c, 0), memory_space=pltpu.SMEM)
    cparams = pltpu.CompilerParams(
        dimension_semantics=("parallel", "arbitrary"),
        vmem_limit_bytes=int(vmem_limit),
    )

    v_row = None
    in_specs = [data_spec, data_spec]
    args = [pred2, gt2]
    if valid is not None:
        v_row = (valid.reshape(B) != 0).astype(jnp.float32)
        in_specs.append(pl.BlockSpec((tb, 1), tile_idx))
        args.append(v_row.reshape(B, 1))

    kernel = functools.partial(
        _cls_loss_sum_kernel, tb=tb, b_real=B,
        tiles_per_core=tiles_per_core, has_valid=valid is not None)

    partials = pl.pallas_call(
        kernel,
        out_shape=jax.ShapeDtypeStruct((nc, 1), jnp.float32),
        grid=grid,
        in_specs=in_specs,
        out_specs=out_spec,
        scratch_shapes=[pltpu.VMEM((tb, D), jnp.float32)],
        compiler_params=cparams,
    )(*args)

    total = jnp.sum(partials)
    if v_row is None:
        return total / jnp.float32(B * D)
    cnt = jnp.sum(v_row)
    # cnt == 0 -> nan, matching torch's mean over an empty selection.
    return total / (cnt * jnp.float32(D))


if __name__ == "__main__":
    key = jax.random.PRNGKey(0)
    k1, k2, k3, k4 = jax.random.split(key, 4)

    def ref_loss(pred, gt, valid):
        p = pred.reshape(pred.shape[0], -1).astype(jnp.float32)
        g = gt.reshape(gt.shape[0], -1).astype(jnp.float32)
        err = -(g * jnp.maximum(jnp.log(p), -100.0)
                + (1.0 - g) * jnp.maximum(jnp.log(1.0 - p), -100.0))
        if valid is None:
            return jnp.mean(err)
        v = (valid.reshape(-1) != 0).astype(jnp.float32)[:, None]
        return jnp.sum(err * v) / (jnp.sum(v) * p.shape[1])

    # Case 1: small f32 classification head (batch=4, 9 binary targets),
    # with and without a valid-row mask.  Single-tile path.
    B, C = 4, 9
    pred = jax.nn.sigmoid(jax.random.normal(k1, (B, C), dtype=jnp.float32))
    gt = (jax.random.uniform(k2, (B, C)) > 0.5).astype(jnp.float32)
    valid = jnp.array([1.0, 0.0, 1.0, 1.0], dtype=jnp.float32)

    got_m = jax.block_until_ready(cls_loss(pred, gt, valid))
    got_a = jax.block_until_ready(cls_loss(pred, gt, None))
    want_m = ref_loss(pred, gt, valid)
    want_a = ref_loss(pred, gt, None)
    assert jnp.allclose(got_m, want_m, rtol=1e-5, atol=1e-6), (got_m, want_m)
    assert jnp.allclose(got_a, want_a, rtol=1e-5, atol=1e-6), (got_a, want_a)

    # Case 2: bf16 inputs, batch not a multiple of the (forced 8-row) tile,
    # exercising the multi-tile + 2-way core-split + partial-tile-mask path.
    B2, C2 = 36, 9
    pred_b = jax.nn.sigmoid(jax.random.normal(k3, (B2, C2))).astype(jnp.bfloat16)
    gt_b = (jax.random.uniform(k4, (B2, C2)) > 0.5).astype(jnp.bfloat16)
    valid_b = (jnp.arange(B2) % 3 != 0).astype(jnp.float32)

    got2_m = jax.block_until_ready(cls_loss(pred_b, gt_b, valid_b, max_tile_rows=8))
    got2_a = jax.block_until_ready(cls_loss(pred_b, gt_b, None, max_tile_rows=8))
    want2_m = ref_loss(pred_b, gt_b, valid_b)
    want2_a = ref_loss(pred_b, gt_b, None)
    assert jnp.allclose(got2_m, want2_m, rtol=5e-4, atol=1e-5), (got2_m, want2_m)
    assert jnp.allclose(got2_a, want2_a, rtol=5e-4, atol=1e-5), (got2_a, want2_a)

    print("KERNEL_OK")
</pallas_src>

<mosaic_0001>
module attributes {stable_mosaic.version = 11 : i64} {
  func.func @_cls_loss_sum_kernel(%arg0: i32, %arg1: i32, %arg2: memref<4x9xf32, #tpu.memory_space<vmem>>, %arg3: memref<4x9xf32, #tpu.memory_space<vmem>>, %arg4: memref<4x1xf32, #tpu.memory_space<vmem>>, %arg5: memref<1x1xf32, #tpu.memory_space<smem>>, %arg6: memref<4x9xf32, #tpu.memory_space<vmem>>) attributes {dimension_semantics = [#tpu.dimension_semantics<parallel>, #tpu.dimension_semantics<arbitrary>], iteration_bounds = array<i64: 1, 1>, scalar_prefetch = 0 : i64, scratch_operands = 1 : i64, tpu.core_type = #tpu.core_type<tc>, window_params = [{transform_indices = @transform_0, window_bounds = array<i64: 4, 9>}, {transform_indices = @transform_1, window_bounds = array<i64: 4, 9>}, {transform_indices = @transform_2, window_bounds = array<i64: 4, 1>}, {transform_indices = @transform_3, window_bounds = array<i64: 1, 1>}]} {
    %c0_i32 = arith.constant 0 : i32
    %0 = arith.cmpi eq, %arg1, %c0_i32 : i32
    %1 = arith.extui %0 : i1 to i32
    %c0_i32_0 = arith.constant 0 : i32
    %2 = arith.cmpi ne, %1, %c0_i32_0 : i32
    scf.if %2 {
      %cst_18 = arith.constant 0.000000e+00 : f32
      %41 = vector.broadcast %cst_18 : f32 to vector<4x9xf32>
      %c0_19 = arith.constant 0 : index
      %c0_20 = arith.constant 0 : index
      %42 = vector.load %arg6[%c0_19, %c0_20] : memref<4x9xf32, #tpu.memory_space<vmem>>, vector<4x9xf32>
      tpu.vector_store %arg6[%c0_19, %c0_20], %41 {strides = array<i32>} : memref<4x9xf32, #tpu.memory_space<vmem>>, vector<4x9xf32>,
    } else {
    }
    %c0 = arith.constant 0 : index
    %c0_1 = arith.constant 0 : index
    %3 = vector.load %arg2[%c0, %c0_1] : memref<4x9xf32, #tpu.memory_space<vmem>>, vector<4x9xf32>
    %c0_2 = arith.constant 0 : index
    %c0_3 = arith.constant 0 : index
    %4 = vector.load %arg3[%c0_2, %c0_3] : memref<4x9xf32, #tpu.memory_space<vmem>>, vector<4x9xf32>
    %5 = math.log %3 : vector<4x9xf32>
    %cst = arith.constant -1.000000e+02 : f32
    %6 = vector.broadcast %cst : f32 to vector<4x9xf32>
    %7 = arith.maximumf %5, %6 : vector<4x9xf32>
    %cst_4 = arith.constant 1.000000e+00 : f32
    %8 = vector.broadcast %cst_4 : f32 to vector<4x9xf32>
    %9 = arith.subf %8, %3 : vector<4x9xf32>
    %10 = math.log %9 : vector<4x9xf32>
    %cst_5 = arith.constant -1.000000e+02 : f32
    %11 = vector.broadcast %cst_5 : f32 to vector<4x9xf32>
    %12 = arith.maximumf %10, %11 : vector<4x9xf32>
    %13 = arith.mulf %4, %7 : vector<4x9xf32>
    %cst_6 = arith.constant 1.000000e+00 : f32
    %14 = vector.broadcast %cst_6 : f32 to vector<4x9xf32>
    %15 = arith.subf %14, %4 : vector<4x9xf32>
    %16 = arith.mulf %15, %12 : vector<4x9xf32>
    %17 = arith.addf %13, %16 : vector<4x9xf32>
    %cst_7 = arith.constant 0.000000e+00 : f32
    %18 = vector.broadcast %cst_7 : f32 to vector<4x9xf32>
    %19 = arith.subf %18, %17 : vector<4x9xf32>
    %c0_8 = arith.constant 0 : index
    %c0_9 = arith.constant 0 : index
    %20 = vector.load %arg4[%c0_8, %c0_9] : memref<4x1xf32, #tpu.memory_space<vmem>>, vector<4x1xf32>
    %21 = vector.broadcast %20 : vector<4x1xf32> to vector<4x9xf32>
    %22 = arith.mulf %19, %21 : vector<4x9xf32>
    %c1_i32 = arith.constant 1 : i32
    %23 = arith.muli %arg0, %c1_i32 : i32
    %24 = arith.addi %23, %arg1 : i32
    %c4_i32 = arith.constant 4 : i32
    %25 = arith.muli %24, %c4_i32 : i32
    %26 = tpu.iota {dimensions = array<i32: 0>} : vector<4x1xi32>
    %27 = vector.broadcast %25 : i32 to vector<4x1xi32>
    %28 = arith.addi %27, %26 : vector<4x1xi32>
    %c0_10 = arith.constant 0 : index
    %c0_11 = arith.constant 0 : index
    %29 = vector.load %arg6[%c0_10, %c0_11] : memref<4x9xf32, #tpu.memory_space<vmem>>, vector<4x9xf32>
    %c4_i32_12 = arith.constant 4 : i32
    %30 = vector.broadcast %c4_i32_12 : i32 to vector<4x1xi32>
    %31 = arith.cmpi slt, %28, %30 : vector<4x1xi32>
    %cst_13 = arith.constant 0.000000e+00 : f32
    %32 = vector.shape_cast %31 : vector<4x1xi1> to vector<4x1xi1>
    %33 = vector.broadcast %32 : vector<4x1xi1> to vector<4x9xi1>
    %34 = vector.broadcast %cst_13 : f32 to vector<4x9xf32>
    %35 = arith.select %33, %22, %34 : vector<4x9xi1>, vector<4x9xf32>
    %36 = arith.addf %29, %35 : vector<4x9xf32>
    %c0_14 = arith.constant 0 : index
    %c0_15 = arith.constant 0 : index
    %37 = vector.load %arg6[%c0_14, %c0_15] : memref<4x9xf32, #tpu.memory_space<vmem>>, vector<4x9xf32>
    tpu.vector_store %arg6[%c0_14, %c0_15], %36 {strides = array<i32>} : memref<4x9xf32, #tpu.memory_space<vmem>>, vector<4x9xf32>,
    %c0_i32_16 = arith.constant 0 : i32
    %38 = arith.cmpi eq, %arg1, %c0_i32_16 : i32
    %39 = arith.extui %38 : i1 to i32
    %c0_i32_17 = arith.constant 0 : i32
    %40 = arith.cmpi ne, %39, %c0_i32_17 : i32
    scf.if %40 {
      %c0_18 = arith.constant 0 : index
      %c0_19 = arith.constant 0 : index
      %41 = vector.load %arg6[%c0_18, %c0_19] : memref<4x9xf32, #tpu.memory_space<vmem>>, vector<4x9xf32>
      %42 = vector.shape_cast %41 : vector<4x9xf32> to vector<1x4x9xf32>
      %cst_20 = arith.constant dense<0.000000e+00> : vector<1xf32>
      %43 = vector.multi_reduction <add>, %42, %cst_20 [1, 2] : vector<1x4x9xf32> to vector<1xf32>
      %44 = vector.shape_cast %43 : vector<1xf32> to vector<1x1x1xf32>
      %45 = vector.extract %44[0, 0, 0] : f32 from vector<1x1x1xf32>
      %c0_21 = arith.constant 0 : index
      %c0_22 = arith.constant 0 : index
      %46 = memref.load %arg5[%c0_21, %c0_22] : memref<1x1xf32, #tpu.memory_space<smem>>
      memref.store %45, %arg5[%c0_21, %c0_22] : memref<1x1xf32, #tpu.memory_space<smem>>
    } else {
    }
    return
  }
  func.func @transform_0(%arg0: i32, %arg1: i32) -> (i32, i32) {
    %c1_i32 = arith.constant 1 : i32
    %0 = arith.muli %arg0, %c1_i32 : i32
    %1 = arith.addi %0, %arg1 : i32
    %c0_i32 = arith.constant 0 : i32
    %2 = arith.minsi %1, %c0_i32 : i32
    %c0_i32_0 = arith.constant 0 : i32
    %c0_i32_1 = arith.constant 0 : i32
    return %2, %c0_i32_0 : i32, i32
  }
  func.func @transform_1(%arg0: i32, %arg1: i32) -> (i32, i32) {
    %c1_i32 = arith.constant 1 : i32
    %0 = arith.muli %arg0, %c1_i32 : i32
    %1 = arith.addi %0, %arg1 : i32
    %c0_i32 = arith.constant 0 : i32
    %2 = arith.minsi %1, %c0_i32 : i32
    %c0_i32_0 = arith.constant 0 : i32
    %c0_i32_1 = arith.constant 0 : i32
    return %2, %c0_i32_0 : i32, i32
  }
  func.func @transform_2(%arg0: i32, %arg1: i32) -> (i32, i32) {
    %c1_i32 = arith.constant 1 : i32
    %0 = arith.muli %arg0, %c1_i32 : i32
    %1 = arith.addi %0, %arg1 : i32
    %c0_i32 = arith.constant 0 : i32
    %2 = arith.minsi %1, %c0_i32 : i32
    %c0_i32_0 = arith.constant 0 : i32
    %c0_i32_1 = arith.constant 0 : i32
    return %2, %c0_i32_0 : i32, i32
  }
  func.func @transform_3(%arg0: i32, %arg1: i32) -> (i32, i32) {
    %c0_i32 = arith.constant 0 : i32
    %c0_i32_0 = arith.constant 0 : i32
    return %arg0, %c0_i32 : i32, i32
  }
}

</mosaic_0001>

<bundles_post_ra>
// kernel: tpu_custom_call.1
= control target key start
LH: loop header
LB: loop body
LE: loop exit
PB: predicated region body
PF: predicated region fallthrough
CT: control target
= control target key end

     0   :  { %vm100_vm0 = vcmask 68608   ;;  %v206_v1 = vmov 0   ;;  %s253_s0 = inlined_call_operand.vmem [shape: f32[4,9], index: 0, kind: input, shape index: {}]   ;;  %s254_s1 = inlined_call_operand.vmem [shape: f32[4,9], index: 1, kind: input, shape index: {}]   ;;  %s255_s2 = inlined_call_operand.vmem [shape: f32[4,1], index: 2, kind: input, shape index: {}]   ;;  %s256_s3 = inlined_call_operand.hbm [shape: f32[1,1], index: 3, kind: output, shape index: {}]  }
   0x1   :  { %v116_v0 = vld [vmem:[%s255_s2] sm:$0xf]  ;;  %189 = vset.pattern.permute.xlu0 %v206_v1 }
   0x2   :  { %8 = vsyncpa [#allocation4], 0  ;;  %119 = vperm.xlu0 %189, %v116_v0   ;;  %v207_v2 = vmov 0.0   ;;  %v102_v3 = vld [vmem:[%s253_s0] sm:$0xf]  ;;  %v125_v15 = vlaneseq  ;;  %s194_s18 = scalar_lea.hbm %s256_s3, 16 }
   0x3   :  { %101 = vst.msk [vmem:[#allocation2] sm:$0xf] %vm100_vm0, %v207_v2  ;;  %v107_v4 = vsub.f32 1.0, %v102_v3  ;;  %190 = vlog2.f32 %v102_v3  ;;  %v103_v9 = vld [vmem:[%s254_s1] sm:$0xf]  ;;  %p195_p0 = scmp.ne.s32.totalorder %s256_s3, %s194_s18  ;;  %p198_p1 = scmp.lt.u32.totalorder %s194_s18, %s256_s3 }
   0x4   :  { %v112_v12 = vsub.f32 1.0, %v103_v9  ;;  %v126_v17 = vshrl.u32 %v125_v15, 7 }
   0x5   :  { %192 = vlog2.f32 %v107_v4  ;;  %p200_p2 = pnand %p198_p1, %p195_p0 }
   0x6   :  { %vm130_vm1 = vcmp.lt.s32.totalorder %v126_v17, 4 }
   0xa   :  { %v129_v21 = vld [vmem:[#allocation2] sm:$0xf] }
   0xd   :  { %v191_v5 = vpop.eup %190 }
   0xe   :  { %v105_v7 = vmul.f32 0.6931472, %v191_v5 }
   0xf   :  { %v193_v6 = vpop.eup %192 }
  0x10   :  { %v109_v8 = vmul.f32 0.6931472, %v193_v6  ;;  %v106_v10 = vmax.f32 %v105_v7, -100.0 }
  0x12   :  { %v110_v11 = vmax.f32 %v109_v8, -100.0  ;;  %v111_v13 = vmul.f32 %v106_v10, %v103_v9 }
  0x14   :  { %v113_v14 = vmul.f32 %v112_v12, %v110_v11 }
  0x16   :  { %v114_v16 = vadd.f32 %v113_v14, %v111_v13 }
  0x18   :  { %v115_v18 = vsub.f32 0.0, %v114_v16 }
  0x81   :  { %v120_v19 = vpop.permute.xlu0 %119 }
  0x82   :  { %v122_v20 = vmul.f32 %v120_v19, %v115_v18 }
  0x84   :  { %v133_v22 = vsel %vm130_vm1, %v122_v20, 0.0 }
  0x85   :  { %v134_v23 = vadd.f32 %v133_v22, %v129_v21 }
  0x87   :  { %136 = vst.msk [vmem:[#allocation2] sm:$0xf] %vm100_vm0, %v134_v23 }
  0x8e   :  { %v140_v24 = vld [vmem:[#allocation2] sm:$0xf] }
  0x8f   :  { %v141_v25 = vsel %vm100_vm0, %v140_v24, 0.0 }
  0x90   :  { %142 = vadd.xlane.f32.xlu0 %v141_v25 }
 0x11d   :  { %v143_v26 = vpop.xlane.xlu0 %142 }
 0x11e   :  { %v144_v27 = vrot.slane %v143_v26, 4 }
 0x120   :  { %v145_v28 = vadd.f32 %v144_v27, %v143_v26 }
 0x122   :  { %v146_v29 = vrot.slane %v145_v28, 2 }
 0x124   :  { %v147_v30 = vadd.f32 %v146_v29, %v145_v28 }
 0x126   :  { %v148_v31 = vrot.slane %v147_v30, 1 }
 0x128   :  { %v149_v32 = vadd.f32 %v148_v31, %v147_v30 }
 0x12a   :  { %184 = vpush %v149_v32 }
 0x15b   :  { %s185_s0 = spop %184 }
 0x15c   :  { %152 = sst [smem:[#allocation3]] %s185_s0 }
 0x15d   :  { %203 = shalt.err (!%p200_p2)
}
 0x15e   :  { %s208_s23 = smov [#allocation3]  }
 0x15f   :  { %160 = dma.smem_to_hbm %s208_s23, 16, %s256_s3, [#allocation4]  }
 0x160   :  { %204 = dma.done.wait [#allocation4], 16  }
 0x161   :  { %205 = vsyncadd [#allocation4], 4294967280 }
 0x162   :  { %164 = sfence }
 0x163   :  { %165 = vsyncpa [#allocation4], 1 }

</bundles_post_ra>
